<compile_context>
chip_gen: v6e
topology: v6e:2x2x1
jax: 0.10.0
libtpu: 0.0.40
codegen_flags: <defaults>
</compile_context>

<pallas_src>
import functools
import math

import jax
import jax.numpy as jnp
from jax.experimental import pallas as pl
from jax.experimental.pallas import tpu as pltpu


def _vmem_limit_bytes():
    """Generation-aware scoped-VMEM budget (~40 MiB on v7x, 64 MiB on v5e/v6e)."""
    cap = 64 * 1024 * 1024  # conservative fallback = v7x per-TC physical VMEM
    try:
        info_fn = getattr(pltpu, "get_tpu_info", None)
        if info_fn is not None:
            cap = int(getattr(info_fn(), "vmem_capacity_bytes", cap))
    except Exception:
        pass
    return min((cap * 5) // 8, 64 * 1024 * 1024)


VMEM_LIMIT_BYTES = _vmem_limit_bytes()


def _tile(dim, target):
    """`target` if it evenly divides `dim` (real BERT dims: 512|4096, 768|768,
    768|3072, ...), else the full dim (toy shapes compile as one full block)."""
    if dim >= target and dim % target == 0:
        return target
    return dim


def _heads_per_group(heads, head_dim):
    """Smallest head group whose lane width is a multiple of 128 (aligned
    slices / stores); falls back to all heads in one group at toy dims."""
    for g in range(1, heads + 1):
        if heads % g == 0 and (g * head_dim) % 128 == 0:
            return g
    return heads


# ------------------- matmul + bias (+ optional GELU) kernels ----------------

def _mm_bias_act_fullk_kernel(x_ref, w_ref, b_ref, o_ref, *, activation):
    # Full-K path: no accumulator scratch, no pl.when phases.
    y = jnp.dot(x_ref[...].astype(jnp.bfloat16),
                w_ref[...].astype(jnp.bfloat16),
                preferred_element_type=jnp.float32) + b_ref[...]
    if activation == "gelu":
        # tanh-approx GELU (exact-erf GELU of HF BERT differs slightly).
        y = jax.nn.gelu(y, approximate=True)
    o_ref[...] = y.astype(o_ref.dtype)


def _mm_bias_act_kernel(x_ref, w_ref, b_ref, o_ref, acc_ref, *, activation):
    @pl.when(pl.program_id(2) == 0)
    def _():
        acc_ref[...] = jnp.zeros_like(acc_ref)

    acc_ref[...] += jnp.dot(
        x_ref[...].astype(jnp.bfloat16),
        w_ref[...].astype(jnp.bfloat16),
        preferred_element_type=jnp.float32)

    @pl.when(pl.program_id(2) == pl.num_programs(2) - 1)
    def _():
        y = acc_ref[...] + b_ref[...]
        if activation == "gelu":
            y = jax.nn.gelu(y, approximate=True)
        o_ref[...] = y.astype(o_ref.dtype)


def matmul_bias_act(x, w, b, activation=None, *, out_dtype=jnp.bfloat16,
                    tm=512, tn=768, tk=768):
    """x:(M,K) @ w:(K,N) + b, optional GELU. bf16 MXU, f32 accumulation,
    bf16 output stream by default."""
    M, K = x.shape
    K2, N = w.shape
    assert K == K2
    tm, tn, tk = _tile(M, tm), _tile(N, tn), _tile(K, tk)
    b2 = b.reshape(1, N).astype(jnp.float32)

    if tk == K:  # full-K contraction: 2-D grid, no scratch accumulator
        kernel = functools.partial(_mm_bias_act_fullk_kernel,
                                   activation=activation)
        return pl.pallas_call(
            kernel,
            out_shape=jax.ShapeDtypeStruct((M, N), out_dtype),
            grid=(M // tm, N // tn),
            in_specs=[
                pl.BlockSpec((tm, K), lambda i, j: (i, 0)),
                pl.BlockSpec((K, tn), lambda i, j: (0, j)),
                pl.BlockSpec((1, tn), lambda i, j: (0, j)),
            ],
            out_specs=pl.BlockSpec((tm, tn), lambda i, j: (i, j)),
            compiler_params=pltpu.CompilerParams(
                dimension_semantics=("parallel", "parallel"),
                vmem_limit_bytes=VMEM_LIMIT_BYTES),
        )(x, w, b2)

    kernel = functools.partial(_mm_bias_act_kernel, activation=activation)
    return pl.pallas_call(
        kernel,
        out_shape=jax.ShapeDtypeStruct((M, N), out_dtype),
        grid=(M // tm, N // tn, K // tk),
        in_specs=[
            pl.BlockSpec((tm, tk), lambda i, j, k: (i, k)),
            pl.BlockSpec((tk, tn), lambda i, j, k: (k, j)),
            pl.BlockSpec((1, tn), lambda i, j, k: (0, j)),
        ],
        out_specs=pl.BlockSpec((tm, tn), lambda i, j, k: (i, j)),
        scratch_shapes=[pltpu.VMEM((tm, tn), jnp.float32)],
        compiler_params=pltpu.CompilerParams(
            dimension_semantics=("parallel", "parallel", "arbitrary"),
            vmem_limit_bytes=VMEM_LIMIT_BYTES),
    )(x, w, b2)


# ------------- matmul with fused residual-add + LayerNorm epilogue ----------

def _mm_res_ln_fullk_kernel(x_ref, w_ref, b_ref, r_ref, g_ref, be_ref,
                            o_ref, *, eps):
    y = jnp.dot(x_ref[...].astype(jnp.bfloat16),
                w_ref[...].astype(jnp.bfloat16),
                preferred_element_type=jnp.float32)
    y = y + b_ref[...] + r_ref[...].astype(jnp.float32)     # residual (f32)
    mu = jnp.mean(y, axis=-1, keepdims=True)
    var = jnp.mean((y - mu) ** 2, axis=-1, keepdims=True)
    o_ref[...] = ((y - mu) * jax.lax.rsqrt(var + eps)
                  * g_ref[...] + be_ref[...]).astype(o_ref.dtype)


def _mm_res_ln_kernel(x_ref, w_ref, b_ref, r_ref, g_ref, be_ref,
                      o_ref, acc_ref, *, eps):
    @pl.when(pl.program_id(1) == 0)
    def _():
        acc_ref[...] = jnp.zeros_like(acc_ref)

    acc_ref[...] += jnp.dot(
        x_ref[...].astype(jnp.bfloat16),
        w_ref[...].astype(jnp.bfloat16),
        preferred_element_type=jnp.float32)

    @pl.when(pl.program_id(1) == pl.num_programs(1) - 1)
    def _():
        y = acc_ref[...] + b_ref[...] + r_ref[...].astype(jnp.float32)
        mu = jnp.mean(y, axis=-1, keepdims=True)
        var = jnp.mean((y - mu) ** 2, axis=-1, keepdims=True)
        o_ref[...] = ((y - mu) * jax.lax.rsqrt(var + eps)
                      * g_ref[...] + be_ref[...]).astype(o_ref.dtype)


def matmul_residual_layernorm(x, w, b, residual, gamma, beta, *,
                              eps=1e-12, out_dtype=jnp.bfloat16,
                              tm=512, tk=768):
    """LayerNorm(residual + x @ w + b) over the last axis, fused epilogue.
    Needs the full output row per block, so only M and K are tiled (N=H)."""
    M, K = x.shape
    K2, N = w.shape
    assert K == K2 and residual.shape == (M, N)
    tm, tk = _tile(M, tm), _tile(K, tk)
    b2 = b.reshape(1, N).astype(jnp.float32)
    g2 = gamma.reshape(1, N).astype(jnp.float32)
    be2 = beta.reshape(1, N).astype(jnp.float32)

    if tk == K:  # full-K contraction: 1-D grid over M, no scratch accumulator
        kernel = functools.partial(_mm_res_ln_fullk_kernel, eps=eps)
        return pl.pallas_call(
            kernel,
            out_shape=jax.ShapeDtypeStruct((M, N), out_dtype),
            grid=(M // tm,),
            in_specs=[
                pl.BlockSpec((tm, K), lambda i: (i, 0)),
                pl.BlockSpec((K, N), lambda i: (0, 0)),
                pl.BlockSpec((1, N), lambda i: (0, 0)),
                pl.BlockSpec((tm, N), lambda i: (i, 0)),
                pl.BlockSpec((1, N), lambda i: (0, 0)),
                pl.BlockSpec((1, N), lambda i: (0, 0)),
            ],
            out_specs=pl.BlockSpec((tm, N), lambda i: (i, 0)),
            compiler_params=pltpu.CompilerParams(
                dimension_semantics=("parallel",),
                vmem_limit_bytes=VMEM_LIMIT_BYTES),
        )(x, w, b2, residual, g2, be2)

    kernel = functools.partial(_mm_res_ln_kernel, eps=eps)
    return pl.pallas_call(
        kernel,
        out_shape=jax.ShapeDtypeStruct((M, N), out_dtype),
        grid=(M // tm, K // tk),
        in_specs=[
            pl.BlockSpec((tm, tk), lambda i, k: (i, k)),
            pl.BlockSpec((tk, N), lambda i, k: (k, 0)),
            pl.BlockSpec((1, N), lambda i, k: (0, 0)),
            pl.BlockSpec((tm, N), lambda i, k: (i, 0)),
            pl.BlockSpec((1, N), lambda i, k: (0, 0)),
            pl.BlockSpec((1, N), lambda i, k: (0, 0)),
        ],
        out_specs=pl.BlockSpec((tm, N), lambda i, k: (i, 0)),
        scratch_shapes=[pltpu.VMEM((tm, N), jnp.float32)],
        compiler_params=pltpu.CompilerParams(
            dimension_semantics=("parallel", "arbitrary"),
            vmem_limit_bytes=VMEM_LIMIT_BYTES),
    )(x, w, b2, residual, g2, be2)


# ---------------------- standalone LayerNorm (embeddings) -------------------

def _ln_kernel(x_ref, g_ref, b_ref, o_ref, *, eps):
    x = x_ref[...].astype(jnp.float32)
    mu = jnp.mean(x, axis=-1, keepdims=True)
    var = jnp.mean((x - mu) ** 2, axis=-1, keepdims=True)
    o_ref[...] = ((x - mu) * jax.lax.rsqrt(var + eps) * g_ref[...]
                  + b_ref[...]).astype(o_ref.dtype)


def layer_norm(x, gamma, beta, *, eps=1e-12, out_dtype=jnp.bfloat16, tm=512):
    M, H = x.shape
    tm = _tile(M, tm)
    kernel = functools.partial(_ln_kernel, eps=eps)
    return pl.pallas_call(
        kernel,
        out_shape=jax.ShapeDtypeStruct((M, H), out_dtype),
        grid=(M // tm,),
        in_specs=[
            pl.BlockSpec((tm, H), lambda i: (i, 0)),
            pl.BlockSpec((1, H), lambda i: (0, 0)),
            pl.BlockSpec((1, H), lambda i: (0, 0)),
        ],
        out_specs=pl.BlockSpec((tm, H), lambda i: (i, 0)),
        compiler_params=pltpu.CompilerParams(
            dimension_semantics=("parallel",),
            vmem_limit_bytes=VMEM_LIMIT_BYTES),
    )(x, gamma.reshape(1, H).astype(jnp.float32),
      beta.reshape(1, H).astype(jnp.float32))


# -------------------------------- attention ---------------------------------
# TODO(synk): whole-sequence scores are held in VMEM; add flash-style KV
# tiling before scaling to sequence lengths >= ~1024 (esp. on v7x 64 MiB VMEM).

def _attention_kernel(qkv_ref, mbias_ref, o_ref, *,
                      heads_per_group, head_dim, scale):
    gw = heads_per_group * head_dim
    blk = qkv_ref[...]              # (S, 3*gw): [Q_group | K_group | V_group]
    bias = mbias_ref[...]           # (1, S) additive mask bias (0 / -10000) f32
    ctx = []
    for h in range(heads_per_group):          # small static loop (2 heads/128 lanes)
        lo = h * head_dim
        # fold 1/sqrt(head_dim) into q (S*hd multiplies instead of S*S)
        q = (blk[:, lo:lo + head_dim] * scale).astype(jnp.bfloat16)
        k = blk[:, gw + lo:gw + lo + head_dim].astype(jnp.bfloat16)
        v = blk[:, 2 * gw + lo:2 * gw + lo + head_dim].astype(jnp.bfloat16)
        # contract head_dim of q against head_dim of k -> no explicit k.T
        s = jax.lax.dot_general(
            q, k, dimension_numbers=(((1,), (1,)), ((), ())),
            preferred_element_type=jnp.float32) + bias
        m = jnp.max(s, axis=-1, keepdims=True)
        e = jnp.exp(s - m)
        # softmax divide -> EUP approximate reciprocal + multiply
        p = e * pl.reciprocal(jnp.sum(e, axis=-1, keepdims=True), approx=True)
        ctx.append(jnp.dot(p.astype(jnp.bfloat16), v,
                           preferred_element_type=jnp.float32))
    out = ctx[0] if heads_per_group == 1 else jnp.concatenate(ctx, axis=-1)
    o_ref[...] = out.astype(o_ref.dtype)      # one lane-dense (S, gw) store


def attention(qkv, mask_bias, *, heads, head_dim, hidden):
    """qkv: (B, S, 3H) bf16, packed per head-group as [Qg|Kg|Vg] column blocks.
    mask_bias: (B, 1, S) additive f32. Returns (B, S, H) bf16 context (heads in
    head-major order -> no transpose afterwards)."""
    B, S, _ = qkv.shape
    hpg = _heads_per_group(heads, head_dim)
    groups = heads // hpg
    gw = hpg * head_dim
    kernel = functools.partial(_attention_kernel, heads_per_group=hpg,
                               head_dim=head_dim,
                               scale=1.0 / math.sqrt(head_dim))
    return pl.pallas_call(
        kernel,
        out_shape=jax.ShapeDtypeStruct((B, S, hidden), jnp.bfloat16),
        grid=(B, groups),
        in_specs=[
            pl.BlockSpec((None, S, 3 * gw), lambda b, g: (b, 0, g)),
            pl.BlockSpec((None, 1, S), lambda b, g: (b, 0, 0)),
        ],
        out_specs=pl.BlockSpec((None, S, gw), lambda b, g: (b, 0, g)),
        compiler_params=pltpu.CompilerParams(
            dimension_semantics=("parallel", "parallel"),
            vmem_limit_bytes=VMEM_LIMIT_BYTES),
    )(qkv, mask_bias)


# ------------------- mean/max pooling + final Linear(2H->1) -----------------

def _pool_out_kernel(h_ref, w_ref, b_ref, o_ref, sum_ref, max_ref, *,
                     hidden, seq_len):
    s = pl.program_id(0)

    @pl.when(s == 0)
    def _():
        sum_ref[...] = jnp.zeros_like(sum_ref)
        max_ref[...] = jnp.full_like(max_ref, -jnp.inf)

    h = h_ref[...].astype(jnp.float32)                  # (B, ts, H)
    sum_ref[...] += jnp.sum(h, axis=1)
    max_ref[...] = jnp.maximum(max_ref[...], jnp.max(h, axis=1))

    @pl.when(s == pl.num_programs(0) - 1)
    def _():
        w = w_ref[...]                                  # (1, 2H) f32
        apool = sum_ref[...] * (1.0 / seq_len)
        mpool = max_ref[...]
        # cat([apool, mpool]) @ w.T == lane-reductions against the two halves
        # of the weight row (no N=1 MXU dot, no (2H,1) padded block).
        y = (jnp.sum(apool * w[:, :hidden], axis=-1, keepdims=True)
             + jnp.sum(mpool * w[:, hidden:], axis=-1, keepdims=True)
             + b_ref[...])
        o_ref[...] = y


def pool_and_out(hidden_states, w_out, b_out, *, ts=512):
    """hidden_states: (B, S, H) bf16; w_out: (2H, 1); b_out: (1,) -> (B, 1) f32."""
    B, S, H = hidden_states.shape
    ts = _tile(S, ts)
    kernel = functools.partial(_pool_out_kernel, hidden=H, seq_len=S)
    return pl.pallas_call(
        kernel,
        out_shape=jax.ShapeDtypeStruct((B, 1), jnp.float32),
        grid=(S // ts,),
        in_specs=[
            pl.BlockSpec((B, ts, H), lambda s: (0, s, 0)),
            pl.BlockSpec((1, 2 * H), lambda s: (0, 0)),
            pl.BlockSpec((1, 1), lambda s: (0, 0)),
        ],
        out_specs=pl.BlockSpec((B, 1), lambda s: (0, 0)),
        scratch_shapes=[pltpu.VMEM((B, H), jnp.float32),
                        pltpu.VMEM((B, H), jnp.float32)],
        compiler_params=pltpu.CompilerParams(
            dimension_semantics=("arbitrary",),
            vmem_limit_bytes=VMEM_LIMIT_BYTES),
    )(hidden_states,
      w_out.reshape(1, 2 * H).astype(jnp.float32),
      b_out.reshape(1, 1).astype(jnp.float32))


# ------------------------------ Model (glue) -------------------------------

CFG = dict(
    vocab=32,
    type_vocab=2,
    max_pos=16,
    hidden=32,
    heads=4,
    head_dim=8,
    intermediate=64,
    layers=2,
)


def pack_qkv_weights(wq, wk, wv, bq, bk, bv, heads, head_dim, heads_per_group):
    """Pack separate Q/K/V projections into one (H, 3H) weight whose columns
    are grouped as [Q_g | K_g | V_g] per head-group (head-major within group).
    The attention kernel slices exactly this layout; head order is preserved,
    so the standard head-major `wo` applies to the resulting context."""
    def hsplit(a):
        return [a[..., h * head_dim:(h + 1) * head_dim] for h in range(heads)]
    qs, ks, vs = hsplit(wq), hsplit(wk), hsplit(wv)
    qb, kb, vb = hsplit(bq), hsplit(bk), hsplit(bv)
    w_cols, b_cols = [], []
    for g0 in range(0, heads, heads_per_group):
        g1 = g0 + heads_per_group
        w_cols += qs[g0:g1] + ks[g0:g1] + vs[g0:g1]
        b_cols += qb[g0:g1] + kb[g0:g1] + vb[g0:g1]
    return (jnp.concatenate(w_cols, axis=-1),
            jnp.concatenate(b_cols, axis=-1))


def init_params(key, cfg):
    keys = iter(jax.random.split(key, 128))
    H, I = cfg["hidden"], cfg["intermediate"]
    hpg = _heads_per_group(cfg["heads"], cfg["head_dim"])

    def nrm(shape):
        return 0.02 * jax.random.normal(next(keys), shape, jnp.float32)

    params = {
        "word_emb": nrm((cfg["vocab"], H)),
        "pos_emb": nrm((cfg["max_pos"], H)),
        "type_emb": nrm((cfg["type_vocab"], H)),
        "emb_ln_g": jnp.ones((H,), jnp.float32),
        "emb_ln_b": jnp.zeros((H,), jnp.float32),
        "layers": [],
        "out_w": nrm((2 * H, 1)),            # final Linear(768*2 -> 1) analogue
        "out_b": jnp.zeros((1,), jnp.float32),
    }
    for _ in range(cfg["layers"]):
        wq, wk, wv = nrm((H, H)), nrm((H, H)), nrm((H, H))
        bq = bk = bv = jnp.zeros((H,), jnp.float32)
        wqkv, bqkv = pack_qkv_weights(wq, wk, wv, bq, bk, bv,
                                      cfg["heads"], cfg["head_dim"], hpg)
        params["layers"].append({
            "wqkv": wqkv.astype(jnp.bfloat16), "bqkv": bqkv,
            "wo": nrm((H, H)).astype(jnp.bfloat16),
            "bo": jnp.zeros((H,), jnp.float32),
            "ln1_g": jnp.ones((H,), jnp.float32),
            "ln1_b": jnp.zeros((H,), jnp.float32),
            "wi": nrm((H, I)).astype(jnp.bfloat16),
            "bi": jnp.zeros((I,), jnp.float32),
            "wf": nrm((I, H)).astype(jnp.bfloat16),
            "bf": jnp.zeros((H,), jnp.float32),
            "ln2_g": jnp.ones((H,), jnp.float32),
            "ln2_b": jnp.zeros((H,), jnp.float32),
        })
    return params


def encoder_layer(x, mask_bias, p, cfg):
    B, S, H = x.shape
    xf = x.reshape(B * S, H)                      # bf16 activation stream

    # fused Q/K/V projection: one matmul, one HBM read of xf, bf16 output
    qkv = matmul_bias_act(xf, p["wqkv"], p["bqkv"]).reshape(B, S, 3 * H)

    # per (batch, head-group) grid step, lane-dense (B, S, H) bf16 output
    ctx = attention(qkv, mask_bias, heads=cfg["heads"],
                    head_dim=cfg["head_dim"], hidden=H)
    ctxf = ctx.reshape(B * S, H)

    # output projection with fused residual-add + LayerNorm epilogue
    x1 = matmul_residual_layernorm(ctxf, p["wo"], p["bo"], xf,
                                   p["ln1_g"], p["ln1_b"])

    # FFN: intermediate matmul with fused GELU, then fused residual + LN
    inter = matmul_bias_act(x1, p["wi"], p["bi"], activation="gelu")
    x2 = matmul_residual_layernorm(inter, p["wf"], p["bf"], x1,
                                   p["ln2_g"], p["ln2_b"])
    return x2.reshape(B, S, H)


def bert_encoder(params, ids, mask, token_type_ids, cfg):
    B, S = ids.shape
    H = cfg["hidden"]
    pos = jnp.arange(S)
    # TODO(synk): embedding gathers stay in XLA (jnp.take); no Pallas gather.
    emb = (jnp.take(params["word_emb"], ids, axis=0)
           + jnp.take(params["pos_emb"], pos, axis=0)[None, :, :]
           + jnp.take(params["type_emb"], token_type_ids, axis=0))
    x = layer_norm(emb.reshape(B * S, H),
                   params["emb_ln_g"], params["emb_ln_b"]).reshape(B, S, H)
    # additive BERT mask bias: 0 where kept, -10000 where masked (kept in f32)
    mask_bias = (1.0 - mask.astype(jnp.float32)).reshape(B, 1, S) * -10000.0
    for p in params["layers"]:
        x = encoder_layer(x, mask_bias, p, cfg)
    return x                                                      # o1: (B,S,H)


def bert_base_uncased_forward(params, ids, mask, token_type_ids, cfg=CFG):
    o1 = bert_encoder(params, ids, mask, token_type_ids, cfg)
    # mean/max pooling over seq (unmasked, exactly like raw torch.mean/max),
    # concat, then Linear(2H -> 1). nn.Dropout(0.3) is identity at inference.
    return pool_and_out(o1, params["out_w"], params["out_b"])     # (B, 1)


# ---------------------------------- main ------------------------------------

if __name__ == "__main__":
    B, S = 2, 8
    key = jax.random.PRNGKey(0)
    k_params, k_ids, k_type = jax.random.split(key, 3)

    params = init_params(k_params, CFG)

    ids = jax.random.randint(k_ids, (B, S), 0, CFG["vocab"], dtype=jnp.int32)
    token_type_ids = jax.random.randint(k_type, (B, S), 0, CFG["type_vocab"],
                                        dtype=jnp.int32)
    # attention mask: second example has the last two tokens padded out.
    mask = jnp.ones((B, S), jnp.int32).at[1, -2:].set(0)

    out = bert_base_uncased_forward(params, ids, mask, token_type_ids)
    out = jax.block_until_ready(out)
    assert out.shape == (B, 1) and out.dtype == jnp.float32
    print("KERNEL_OK")
</pallas_src>

<mosaic_0001>
module attributes {stable_mosaic.version = 11 : i64} {
  func.func @_ln_kernel(%arg0: i32, %arg1: memref<16x32xf32, #tpu.memory_space<vmem>>, %arg2: memref<1x32xf32, #tpu.memory_space<vmem>>, %arg3: memref<1x32xf32, #tpu.memory_space<vmem>>, %arg4: memref<16x32xbf16, #tpu.memory_space<vmem>>) attributes {dimension_semantics = [#tpu.dimension_semantics<parallel>], iteration_bounds = array<i64: 1>, scalar_prefetch = 0 : i64, scratch_operands = 0 : i64, tpu.core_type = #tpu.core_type<tc>, window_params = [{transform_indices = @transform_0, window_bounds = array<i64: 16, 32>}, {pipeline_mode = #tpu.pipeline_mode<synchronous>, transform_indices = @transform_1, window_bounds = array<i64: 1, 32>}, {pipeline_mode = #tpu.pipeline_mode<synchronous>, transform_indices = @transform_2, window_bounds = array<i64: 1, 32>}, {transform_indices = @transform_3, window_bounds = array<i64: 16, 32>}]} {
    %c0 = arith.constant 0 : index
    %c0_0 = arith.constant 0 : index
    %0 = vector.load %arg1[%c0, %c0_0] : memref<16x32xf32, #tpu.memory_space<vmem>>, vector<16x32xf32>
    %cst = arith.constant dense<0.000000e+00> : vector<16xf32>
    %1 = vector.multi_reduction <add>, %0, %cst [1] : vector<16x32xf32> to vector<16xf32>
    %2 = vector.shape_cast %1 : vector<16xf32> to vector<16x1xf32>
    %cst_1 = arith.constant 3.200000e+01 : f32
    %3 = vector.broadcast %cst_1 : f32 to vector<16x1xf32>
    %4 = arith.divf %2, %3 : vector<16x1xf32>
    %5 = vector.broadcast %4 : vector<16x1xf32> to vector<16x32xf32>
    %6 = arith.subf %0, %5 : vector<16x32xf32>
    %7 = arith.mulf %6, %6 : vector<16x32xf32>
    %cst_2 = arith.constant dense<0.000000e+00> : vector<16xf32>
    %8 = vector.multi_reduction <add>, %7, %cst_2 [1] : vector<16x32xf32> to vector<16xf32>
    %9 = vector.shape_cast %8 : vector<16xf32> to vector<16x1xf32>
    %cst_3 = arith.constant 3.200000e+01 : f32
    %10 = vector.broadcast %cst_3 : f32 to vector<16x1xf32>
    %11 = arith.divf %9, %10 : vector<16x1xf32>
    %12 = vector.broadcast %4 : vector<16x1xf32> to vector<16x32xf32>
    %13 = arith.subf %0, %12 : vector<16x32xf32>
    %cst_4 = arith.constant 9.99999996E-13 : f32
    %14 = vector.broadcast %cst_4 : f32 to vector<16x1xf32>
    %15 = arith.addf %11, %14 : vector<16x1xf32>
    %16 = math.rsqrt %15 : vector<16x1xf32>
    %17 = vector.broadcast %16 : vector<16x1xf32> to vector<16x32xf32>
    %18 = arith.mulf %13, %17 : vector<16x32xf32>
    %c0_5 = arith.constant 0 : index
    %c0_6 = arith.constant 0 : index
    %19 = vector.load %arg2[%c0_5, %c0_6] : memref<1x32xf32, #tpu.memory_space<vmem>>, vector<1x32xf32>
    %20 = vector.broadcast %19 : vector<1x32xf32> to vector<16x32xf32>
    %21 = arith.mulf %18, %20 : vector<16x32xf32>
    %c0_7 = arith.constant 0 : index
    %c0_8 = arith.constant 0 : index
    %22 = vector.load %arg3[%c0_7, %c0_8] : memref<1x32xf32, #tpu.memory_space<vmem>>, vector<1x32xf32>
    %23 = vector.broadcast %22 : vector<1x32xf32> to vector<16x32xf32>
    %24 = arith.addf %21, %23 : vector<16x32xf32>
    %25 = arith.truncf %24 : vector<16x32xf32> to vector<16x32xbf16>
    %c0_9 = arith.constant 0 : index
    %c0_10 = arith.constant 0 : index
    %26 = vector.load %arg4[%c0_9, %c0_10] : memref<16x32xbf16, #tpu.memory_space<vmem>>, vector<16x32xbf16>
    tpu.vector_store %arg4[%c0_9, %c0_10], %25 {strides = array<i32>} : memref<16x32xbf16, #tpu.memory_space<vmem>>, vector<16x32xbf16>,
    return
  }
  func.func @transform_0(%arg0: i32) -> (i32, i32) {
    %c0_i32 = arith.constant 0 : i32
    %c0_i32_0 = arith.constant 0 : i32
    return %arg0, %c0_i32 : i32, i32
  }
  func.func @transform_1(%arg0: i32) -> (i32, i32) {
    %c0_i32 = arith.constant 0 : i32
    %c0_i32_0 = arith.constant 0 : i32
    %c0_i32_1 = arith.constant 0 : i32
    return %c0_i32, %c0_i32_0 : i32, i32
  }
  func.func @transform_2(%arg0: i32) -> (i32, i32) {
    %c0_i32 = arith.constant 0 : i32
    %c0_i32_0 = arith.constant 0 : i32
    %c0_i32_1 = arith.constant 0 : i32
    return %c0_i32, %c0_i32_0 : i32, i32
  }
  func.func @transform_3(%arg0: i32) -> (i32, i32) {
    %c0_i32 = arith.constant 0 : i32
    %c0_i32_0 = arith.constant 0 : i32
    return %arg0, %c0_i32 : i32, i32
  }
}

</mosaic_0001>

<bundles_post_ra>
// kernel: tpu_custom_call.1
= control target key start
LH: loop header
LB: loop body
LE: loop exit
PB: predicated region body
PF: predicated region fallthrough
CT: control target
= control target key end

     0   :  { %8 = vsyncpa [#allocation3], 0  ;;  %s207_s0 = inlined_call_operand.hbm [shape: f32[16,32], index: 0, kind: input, shape index: {}]   ;;  %s208_s1 = inlined_call_operand.vmem [shape: f32[1,32], index: 1, kind: input, shape index: {}]   ;;  %s209_s2 = inlined_call_operand.vmem [shape: f32[1,32], index: 2, kind: input, shape index: {}]   ;;  %s210_s3 = inlined_call_operand.hbm [shape: bf16[16,32], index: 3, kind: output, shape index: {}]  }
   0x1   :  { %9 = vsyncpa [#allocation4], 0  ;;  %s165_s12 = smov [#allocation2]  }
   0x2   :  { %s15_s13 = sshll.u32 %s165_s12, 4  ;;  %s16_s13 = int_to_ptr.vmem [resolvable:$true] %s15_s13 }
   0x3   :  { %s129_s14 = scalar_lea.vmem %s16_s13, 256  ;;  %p134_p1 = scmp.lt.s32.totalorder %s16_s13, %s16_s13 }
   0x4   :  { %p130_p0 = scmp.ne.s32.totalorder %s16_s13, %s129_s14  ;;  %p135_p2 = scmp.lt.s32.totalorder %s129_s14, %s129_s14 }
   0x6   :  { %p136_p3 = por %p135_p2, %p134_p1 }
   0x8   :  { %p137_p4 = pnand %p136_p3, %p130_p0 }
   0xa   :  { %140 = shalt.err (!%p137_p4)
}
   0xb   :  { %s166_s15 = smov 128   ;;  %s167_s16 = smov 8  }
   0xc   :  { %21 = dma.hbm_to_vmem [thread:$0]  %s207_s0, 256, %s16_s13, [#allocation3], %s166_s15, %s166_s15, %s167_s16  }
   0xd   :  { %161 = dma.done.wait [#allocation3], 256  }
   0xe   :  { %162 = vsyncadd [#allocation3], 4294967040  ;;  %vm31_vm0 = vcmask 261120   ;;  %v29_v0 = vld [vmem:[#allocation2] sm:$0xff]  ;;  %v30_v1 = vld [vmem:[#allocation2 + $0x8] sm:$0xff]  ;;  %vm85_vm1 = vcmask 257024  }
   0xf   :  { %v32_v2 = vsel %vm31_vm0, %v29_v0, 0.0  ;;  %v35_v3 = vsel %vm31_vm0, %v30_v1, 0.0  ;;  %v105_v21 = vld [vmem:[%s208_s1] ss:$0 sm:$0xff]  ;;  %s168_s22 = smov [#allocation5]  }
  0x10   :  { %33 = vadd.xlane.f32.xlu0 %v32_v2  ;;  %v106_v23 = vld [vmem:[%s209_s2] ss:$0 sm:$0xff]  ;;  %s93_s23 = sshll.u32 %s168_s22, 4  ;;  %s94_s23 = int_to_ptr.vmem [resolvable:$true] %s93_s23 }
  0x11   :  { %s141_s1 = scalar_lea.vmem %s94_s23, 128  ;;  %p146_p6 = scmp.lt.s32.totalorder %s94_s23, %s94_s23 }
  0x12   :  { %p142_p5 = scmp.ne.s32.totalorder %s94_s23, %s141_s1  ;;  %p147_p7 = scmp.lt.s32.totalorder %s141_s1, %s141_s1 }
  0x14   :  { %36 = vadd.xlane.f32.xlu0 %v35_v3  ;;  %p148_p8 = por %p147_p7, %p146_p6 }
  0x16   :  { %p149_p9 = pnand %p148_p8, %p142_p5 }
  0x99   :  { %v34_v4 = vpop.xlane.xlu0 %33 }
  0x9a   :  { %v39_v5 = vmul.f32 0.03125, %v34_v4 }
  0x9c   :  { %v41_v6 = vsub.f32 %v29_v0, %v39_v5 }
  0x9d   :  { %v37_v7 = vpop.xlane.xlu0 %36 }
  0x9e   :  { %v40_v8 = vmul.f32 0.03125, %v37_v7  ;;  %v43_v9 = vmul.f32 %v41_v6, %v41_v6 }
  0xa0   :  { %v42_v10 = vsub.f32 %v30_v1, %v40_v8  ;;  %v45_v11 = vsel %vm31_vm0, %v43_v9, 0.0 }
  0xa1   :  { %46 = vadd.xlane.f32.xlu1 %v45_v11 }
  0xa2   :  { %v44_v12 = vmul.f32 %v42_v10, %v42_v10 }
  0xa4   :  { %v48_v13 = vsel %vm31_vm0, %v44_v12, 0.0 }
  0xa5   :  { %49 = vadd.xlane.f32.xlu1 %v48_v13 }
 0x12a   :  { %v47_v14 = vpop.xlane.xlu1 %46 }
 0x12b   :  { %v51_v15 = vmul.f32 0.03125, %v47_v14 }
 0x12d   :  { %v53_v16 = vadd.f32 1e-12, %v51_v15 }
 0x12e   :  { %v50_v17 = vpop.xlane.xlu1 %49 }
 0x12f   :  { %117 = vrsqrt.f32 %v53_v16  ;;  %v52_v18 = vmul.f32 0.03125, %v50_v17 }
 0x131   :  { %v54_v19 = vadd.f32 1e-12, %v52_v18 }
 0x133   :  { %119 = vrsqrt.f32 %v54_v19 }
 0x13c   :  { %v118_v20 = vpop.eup %117 }
 0x13d   :  { %v57_v22 = vmul.f32 %v118_v20, %v41_v6 }
 0x13f   :  { %v66_v24 = vmul.f32 %v105_v21, %v57_v22 }
 0x140   :  { %v120_v25 = vpop.eup %119 }
 0x141   :  { %v58_v26 = vmul.f32 %v120_v25, %v42_v10  ;;  %v75_v27 = vadd.f32 %v106_v23, %v66_v24 }
 0x143   :  { %v67_v28 = vmul.f32 %v105_v21, %v58_v26  ;;  %v109_v29 = vpack.c.bf16 %v75_v27, %v75_v27 }
 0x145   :  { %v76_v30 = vadd.f32 %v106_v23, %v67_v28  ;;  %86 = vst.msk [vmem:[#allocation5] sm:$0xf] %vm85_vm1, %v109_v29 }
 0x147   :  { %v110_v31 = vpack.c.bf16 %v76_v30, %v76_v30 }
 0x149   :  { %87 = vst.msk [vmem:[#allocation5 + $0x4] sm:$0xf] %vm85_vm1, %v110_v31 }
 0x14a   :  { %152 = shalt.err (!%p149_p9)
}
 0x14b   :  { %s169_s2 = smov 64   ;;  %s170_s24 = smov 4  }
 0x14c   :  { %99 = dma.vmem_to_hbm [thread:$0]  %s94_s23, 128, %s210_s3, [#allocation4], %s169_s2, %s169_s2, %s170_s24  }
 0x14d   :  { %163 = dma.done.wait [#allocation4], 128  }
 0x14e   :  { %164 = vsyncadd [#allocation4], 4294967168 }
 0x14f   :  { %103 = vsyncpa [#allocation3], 1 }
 0x150   :  { %104 = vsyncpa [#allocation4], 1 }

</bundles_post_ra>
